<compile_context>
chip_gen: v5e
topology: v5e:2x2
jax: 0.10.0
libtpu: 0.0.40
codegen_flags: <defaults>
</compile_context>

<pallas_src>
import jax
import jax.numpy as jnp
from jax.experimental import pallas as pl
from jax.experimental.pallas import tpu as pltpu

HIDDEN_SIZE = 32   # H
OUTPUT_SIZE = 20   # O
MAX_LENGTH = 15    # L

H, O, L = HIDDEN_SIZE, OUTPUT_SIZE, MAX_LENGTH
H2, H3 = 2 * H, 3 * H

# ---------------- weight slab (bf16, shape (2H, 384)) column layout ------------
#  stage-1 fused block (dot over ALL 2H rows, cols 0:160):
#    cols C_ATTN : C_ATTN+L    -> attn Linear (2H, L)
#    cols C_HRZN : C_HRZN+3H   -> [0 ; W_h_rzn]   (rows 0:H MUST stay zero)
#    cols C_CEMB : C_CEMB+H    -> [W_comb[0:H] ; 0] (rows H:2H MUST stay zero)
#  stage-2 blocks (dots over rows 0:H only):
#    cols C_CHID : C_CHID+H    -> W_comb[H:2H]   (attn_applied path)
#    cols C_IRZN : C_IRZN+3H   -> GRU input-path weights (H, 3H)  [r|z|n]
#    cols C_OUT  : C_OUT+O     -> out Linear (H, O)
W_COLS = 384
C_ATTN, C_HRZN, C_CEMB = 0, 32, 128
S1_W = 160                     # stage-1 fused dot width
C_CHID, C_IRZN, C_OUT = 160, 192, 288

# ---------------- activation slab (f32, shape (24, 128)) row layout ------------
#  row R_XH : cols 0:2H        -> [embedded | hidden]
#  row R_B1 : cols 0:L         -> b_attn ; cols 32:128 -> b_h_rzn
#  row R_B2 : cols 0:H         -> b_comb ; cols H:H+3H -> b_i_rzn
#  row R_B3 : cols 0:O         -> b_out
#  rows R_ENC : R_ENC+L, 0:H   -> encoder_outputs (L, H)
ACT_ROWS = 24
R_XH, R_B1, R_B2, R_B3, R_ENC = 0, 1, 2, 3, 8

# ---------------- packed output row layout (single (1,128) block) --------------
OUT_COLS = 128
LP_LO, LP_HI = 0, O            # log-softmax output
NH_LO, NH_HI = 32, 32 + H      # new hidden
AW_LO, AW_HI = 64, 64 + L      # attention weights


def attn_decoder_kernel(act_ref, w_ref, out_ref):
    f32, bf16 = jnp.float32, jnp.bfloat16

    xh = act_ref[R_XH:R_XH + 1, 0:H2]              # (1, 2H) f32  [emb | hid]
    hid = xh[:, H:H2]
    b1 = act_ref[R_B1:R_B1 + 1, :]                 # (1, 128)
    b2 = act_ref[R_B2:R_B2 + 1, :]                 # (1, 128)
    b_out = act_ref[R_B3:R_B3 + 1, 0:O]            # (1, O)
    enc = act_ref[R_ENC:R_ENC + L, 0:H]            # (L, H) f32

    xh_bf = xh.astype(bf16)

    # --- stage 1: ONE fused dot -> attn logits, GRU hidden-path rzn, and the
    #     embedded-part of attn_combine (hidden rows of that block are zero). ---
    y1 = jnp.dot(xh_bf, w_ref[:, 0:S1_W], preferred_element_type=f32)   # (1,160)
    attn_logits = y1[:, C_ATTN:C_ATTN + L] + b1[:, C_ATTN:C_ATTN + L]   # (1, L)
    h_rzn = y1[:, C_HRZN:C_HRZN + H3] + b1[:, C_HRZN:C_HRZN + H3]       # (1, 3H)
    comb_emb = y1[:, C_CEMB:C_CEMB + H]                                 # (1, H)

    # --- attention softmax (exact division, f32) -------------------------------
    m = jnp.max(attn_logits, axis=1, keepdims=True)
    e = jnp.exp(attn_logits - m)
    attn_w = e / jnp.sum(e, axis=1, keepdims=True)                      # (1, L)

    # --- attn_applied = attn_weights @ encoder_outputs -------------------------
    attn_applied = jnp.dot(attn_w.astype(bf16), enc.astype(bf16),
                           preferred_element_type=f32)                  # (1, H)

    # --- attn_combine (no lane concat): emb-part came from stage 1 -------------
    comb_hid = jnp.dot(attn_applied.astype(bf16),
                       w_ref[0:H, C_CHID:C_CHID + H],
                       preferred_element_type=f32)                      # (1, H)
    x = jnp.maximum(comb_emb + comb_hid + b2[:, 0:H], 0.0)              # (1, H)

    # --- GRU input path: one fused dot for r|z|n --------------------------------
    i_rzn = jnp.dot(x.astype(bf16), w_ref[0:H, C_IRZN:C_IRZN + H3],
                    preferred_element_type=f32) + b2[:, H:H + H3]       # (1, 3H)

    r = jax.nn.sigmoid(i_rzn[:, 0:H] + h_rzn[:, 0:H])
    z = jax.nn.sigmoid(i_rzn[:, H:2 * H] + h_rzn[:, H:2 * H])
    n = jnp.tanh(i_rzn[:, 2 * H:H3] + r * h_rzn[:, 2 * H:H3])
    h_new = (1.0 - z) * n + z * hid                                     # (1, H)

    # --- output projection + log_softmax ---------------------------------------
    logits = jnp.dot(h_new.astype(bf16), w_ref[0:H, C_OUT:C_OUT + O],
                     preferred_element_type=f32) + b_out                # (1, O)
    lm = jnp.max(logits, axis=1, keepdims=True)
    s = logits - lm
    logp = s - jnp.log(jnp.sum(jnp.exp(s), axis=1, keepdims=True))      # (1, O)

    # --- pack the 3 results into one (1,128) VMEM block (single HBM writeback) --
    out_ref[...] = jnp.zeros((1, OUT_COLS), f32)
    out_ref[:, LP_LO:LP_HI] = logp
    out_ref[:, NH_LO:NH_HI] = h_new
    out_ref[:, AW_LO:AW_HI] = attn_w


def make_params(key, hidden_size=H, output_size=O, max_length=L):
    """Random parameters in natural (already-transposed, (in,out)) layout."""
    h, o, l = hidden_size, output_size, max_length
    ks = jax.random.split(key, 12)
    w = lambda k, shape: 0.1 * jax.random.normal(k, shape, dtype=jnp.float32)
    return {
        "embedding": w(ks[0], (o, h)),        # nn.Embedding(O, H)
        "w_attn":    w(ks[1], (2 * h, l)),    # nn.Linear(2H, L), transposed
        "b_attn":    w(ks[2], (1, l)),
        "w_comb":    w(ks[3], (2 * h, h)),    # nn.Linear(2H, H), transposed
        "b_comb":    w(ks[4], (1, h)),
        "w_i_rzn":   w(ks[5], (h, 3 * h)),    # GRU weight_ih^T, gates [r|z|n]
        "b_i_rzn":   w(ks[6], (1, 3 * h)),
        "w_h_rzn":   w(ks[7], (h, 3 * h)),    # GRU weight_hh^T, gates [r|z|n]
        "b_h_rzn":   w(ks[8], (1, 3 * h)),
        "w_out":     w(ks[9], (h, o)),        # nn.Linear(H, O), transposed
        "b_out":     w(ks[10], (1, o)),
    }


def prepack(params):
    """One-time (per parameter set) packing into a bf16 weight slab and an f32
    activation-slab template that already contains the biases.

    Invariants the fused stage-1 dot relies on (guaranteed by the zeros init +
    only setting the complementary rows):
      wslab[0:H,  C_HRZN:C_HRZN+H3] == 0  (embedded must NOT feed GRU hidden path)
      wslab[H:2H, C_CEMB:C_CEMB+H ] == 0  (hidden must NOT feed combine emb-part)
    """
    f32 = jnp.float32
    w = jnp.zeros((H2, W_COLS), f32)
    w = w.at[:, C_ATTN:C_ATTN + L].set(params["w_attn"])
    w = w.at[H:H2, C_HRZN:C_HRZN + H3].set(params["w_h_rzn"])     # hidden rows only
    w = w.at[0:H, C_CEMB:C_CEMB + H].set(params["w_comb"][0:H])   # emb rows only
    w = w.at[0:H, C_CHID:C_CHID + H].set(params["w_comb"][H:H2])
    w = w.at[0:H, C_IRZN:C_IRZN + H3].set(params["w_i_rzn"])
    w = w.at[0:H, C_OUT:C_OUT + O].set(params["w_out"])
    wslab = w.astype(jnp.bfloat16)                                # halves weight DMA

    act = jnp.zeros((ACT_ROWS, 128), f32)                         # biases stay f32
    act = act.at[R_B1, C_ATTN:C_ATTN + L].set(params["b_attn"][0])
    act = act.at[R_B1, C_HRZN:C_HRZN + H3].set(params["b_h_rzn"][0])
    act = act.at[R_B2, 0:H].set(params["b_comb"][0])
    act = act.at[R_B2, H:H + H3].set(params["b_i_rzn"][0])
    act = act.at[R_B3, 0:O].set(params["b_out"][0])
    return wslab, act


@jax.jit
def _attn_decoder_step(input_token, hidden, encoder_outputs,
                       embedding, wslab, act_template):
    # Glue (inside jit): embedding gather + [emb|hid] concat + slab fill.
    emb = embedding[input_token[0, 0]].reshape(1, H)              # (1, H)
    hid = hidden[0]                                               # (1, H)
    xh = jnp.concatenate([emb, hid], axis=1)                      # (1, 2H)

    act = act_template.at[R_XH, 0:H2].set(xh[0])
    act = act.at[R_ENC:R_ENC + L, 0:H].set(encoder_outputs)

    vmem = pl.BlockSpec(memory_space=pltpu.MemorySpace.VMEM)
    packed = pl.pallas_call(
        attn_decoder_kernel,
        out_shape=jax.ShapeDtypeStruct((1, OUT_COLS), jnp.float32),
        in_specs=[vmem, vmem],
        out_specs=vmem,
    )(act, wslab)

    logp = packed[:, LP_LO:LP_HI]                                 # (1, O)
    new_hidden = packed[:, NH_LO:NH_HI].reshape(1, 1, H)          # (1, 1, H)
    attn_weights = packed[:, AW_LO:AW_HI]                         # (1, L)
    return logp, new_hidden, attn_weights


def attn_decoder_forward(input_token, hidden, encoder_outputs, params, packed=None):
    """input_token: (1,1) int32; hidden: (1,1,H) f32; encoder_outputs: (L,H) f32.

    Pass `packed=prepack(params)` to reuse the packed slabs across calls
    (recommended — packing is hoisted out of the per-call path).
    """
    if packed is None:
        packed = prepack(params)
    wslab, act_template = packed
    return _attn_decoder_step(input_token, hidden, encoder_outputs,
                              params["embedding"], wslab, act_template)


def attn_decoder_reference(input_token, hidden, encoder_outputs, params):
    """Pure-JAX f32 reference (mirrors the PyTorch module, eval mode)."""
    emb = params["embedding"][input_token[0, 0]].reshape(1, H)
    hid = hidden[0]
    cat = jnp.concatenate([emb, hid], axis=1)
    attn_w = jax.nn.softmax(cat @ params["w_attn"] + params["b_attn"], axis=1)
    attn_applied = attn_w @ encoder_outputs
    comb = jnp.concatenate([emb, attn_applied], axis=1) @ params["w_comb"] \
        + params["b_comb"]
    x = jnp.maximum(comb, 0.0)
    i_rzn = x @ params["w_i_rzn"] + params["b_i_rzn"]
    h_rzn = hid @ params["w_h_rzn"] + params["b_h_rzn"]
    r = jax.nn.sigmoid(i_rzn[:, 0:H] + h_rzn[:, 0:H])
    z = jax.nn.sigmoid(i_rzn[:, H:2 * H] + h_rzn[:, H:2 * H])
    n = jnp.tanh(i_rzn[:, 2 * H:] + r * h_rzn[:, 2 * H:])
    h_new = (1.0 - z) * n + z * hid
    logp = jax.nn.log_softmax(h_new @ params["w_out"] + params["b_out"], axis=1)
    return logp, h_new.reshape(1, 1, H), attn_w


if __name__ == "__main__":
    key = jax.random.PRNGKey(0)
    k_params, k_hid, k_enc = jax.random.split(key, 3)

    params = make_params(k_params)
    packed = prepack(params)          # packed once per parameter set (cached)

    input_token = jnp.array([[3]], dtype=jnp.int32)                       # (1, 1)
    hidden = 0.1 * jax.random.normal(k_hid, (1, 1, HIDDEN_SIZE), jnp.float32)
    encoder_outputs = 0.1 * jax.random.normal(
        k_enc, (MAX_LENGTH, HIDDEN_SIZE), jnp.float32)

    logp, new_hidden, attn_weights = attn_decoder_forward(
        input_token, hidden, encoder_outputs, params, packed=packed)
    jax.block_until_ready((logp, new_hidden, attn_weights))

    assert logp.shape == (1, OUTPUT_SIZE)
    assert new_hidden.shape == (1, 1, HIDDEN_SIZE)
    assert attn_weights.shape == (1, MAX_LENGTH)
    assert bool(jnp.all(jnp.isfinite(logp)))
    assert bool(jnp.abs(jnp.sum(attn_weights) - 1.0) < 1e-3)
    assert bool(jnp.abs(jnp.sum(jnp.exp(logp)) - 1.0) < 1e-3)

    # Numerical check vs the f32 reference (bf16 MXU operands => small delta).
    r_logp, r_hidden, r_attn = attn_decoder_reference(
        input_token, hidden, encoder_outputs, params)
    assert bool(jnp.allclose(logp, r_logp, atol=2e-2))
    assert bool(jnp.allclose(new_hidden, r_hidden, atol=2e-2))
    assert bool(jnp.allclose(attn_weights, r_attn, atol=2e-2))

    print("KERNEL_OK")
</pallas_src>

<mosaic_0001>
module attributes {stable_mosaic.version = 11 : i64} {
  func.func @attn_decoder_kernel(%arg0: memref<24x128xf32, #tpu.memory_space<vmem>>, %arg1: memref<64x384xbf16, #tpu.memory_space<vmem>>, %arg2: memref<1x128xf32, #tpu.memory_space<vmem>>) attributes {dimension_semantics = [], scalar_prefetch = 0 : i64, scratch_operands = 0 : i64, tpu.core_type = #tpu.core_type<tc>} {
    %c0 = arith.constant 0 : index
    %c0_0 = arith.constant 0 : index
    %0 = vector.load %arg0[%c0, %c0_0] : memref<24x128xf32, #tpu.memory_space<vmem>>, vector<1x64xf32>
    %1 = vector.extract_strided_slice %0 {offsets = [0, 32], sizes = [1, 32], strides = [1, 1]} : vector<1x64xf32> to vector<1x32xf32>
    %c1 = arith.constant 1 : index
    %c0_1 = arith.constant 0 : index
    %2 = vector.load %arg0[%c1, %c0_1] : memref<24x128xf32, #tpu.memory_space<vmem>>, vector<1x128xf32>
    %c2 = arith.constant 2 : index
    %c0_2 = arith.constant 0 : index
    %3 = vector.load %arg0[%c2, %c0_2] : memref<24x128xf32, #tpu.memory_space<vmem>>, vector<1x128xf32>
    %c3 = arith.constant 3 : index
    %c0_3 = arith.constant 0 : index
    %4 = vector.load %arg0[%c3, %c0_3] : memref<24x128xf32, #tpu.memory_space<vmem>>, vector<1x20xf32>
    %c8 = arith.constant 8 : index
    %c0_4 = arith.constant 0 : index
    %5 = vector.load %arg0[%c8, %c0_4] : memref<24x128xf32, #tpu.memory_space<vmem>>, vector<15x32xf32>
    %6 = arith.truncf %0 : vector<1x64xf32> to vector<1x64xbf16>
    %c0_5 = arith.constant 0 : index
    %c0_6 = arith.constant 0 : index
    %7 = vector.load %arg1[%c0_5, %c0_6] : memref<64x384xbf16, #tpu.memory_space<vmem>>, vector<64x160xbf16>
    %cst = arith.constant dense<0.000000e+00> : vector<1x160xf32>
    %8 = tpu.matmul %6, %7, %cst {dimension_numbers = #tpu.dot_dimension_numbers<[1], [0], [0], [1], [0, 0, 1, 1], [], []>} : vector<1x64xbf16>, vector<64x160xbf16>, vector<1x160xf32> -> vector<1x160xf32>
    %9 = vector.extract_strided_slice %8 {offsets = [0, 0], sizes = [1, 15], strides = [1, 1]} : vector<1x160xf32> to vector<1x15xf32>
    %10 = vector.extract_strided_slice %2 {offsets = [0, 0], sizes = [1, 15], strides = [1, 1]} : vector<1x128xf32> to vector<1x15xf32>
    %11 = arith.addf %9, %10 : vector<1x15xf32>
    %12 = vector.extract_strided_slice %8 {offsets = [0, 32], sizes = [1, 96], strides = [1, 1]} : vector<1x160xf32> to vector<1x96xf32>
    %13 = vector.extract_strided_slice %2 {offsets = [0, 32], sizes = [1, 96], strides = [1, 1]} : vector<1x128xf32> to vector<1x96xf32>
    %14 = arith.addf %12, %13 : vector<1x96xf32>
    %15 = vector.extract_strided_slice %8 {offsets = [0, 128], sizes = [1, 32], strides = [1, 1]} : vector<1x160xf32> to vector<1x32xf32>
    %cst_7 = arith.constant dense<0xFF800000> : vector<1xf32>
    %16 = vector.multi_reduction <maximumf>, %11, %cst_7 [1] : vector<1x15xf32> to vector<1xf32>
    %17 = vector.shape_cast %16 : vector<1xf32> to vector<1x1xf32>
    %18 = vector.broadcast %17 : vector<1x1xf32> to vector<1x15xf32>
    %19 = arith.subf %11, %18 : vector<1x15xf32>
    %20 = math.exp %19 : vector<1x15xf32>
    %cst_8 = arith.constant dense<0.000000e+00> : vector<1xf32>
    %21 = vector.multi_reduction <add>, %20, %cst_8 [1] : vector<1x15xf32> to vector<1xf32>
    %22 = vector.shape_cast %21 : vector<1xf32> to vector<1x1xf32>
    %23 = vector.broadcast %22 : vector<1x1xf32> to vector<1x15xf32>
    %24 = arith.divf %20, %23 : vector<1x15xf32>
    %25 = arith.truncf %24 : vector<1x15xf32> to vector<1x15xbf16>
    %26 = arith.truncf %5 : vector<15x32xf32> to vector<15x32xbf16>
    %cst_9 = arith.constant dense<0.000000e+00> : vector<1x32xf32>
    %27 = tpu.matmul %25, %26, %cst_9 {dimension_numbers = #tpu.dot_dimension_numbers<[1], [0], [0], [1], [0, 0, 1, 1], [], []>} : vector<1x15xbf16>, vector<15x32xbf16>, vector<1x32xf32> -> vector<1x32xf32>
    %28 = arith.truncf %27 : vector<1x32xf32> to vector<1x32xbf16>
    %c0_10 = arith.constant 0 : index
    %c160 = arith.constant 160 : index
    %29 = vector.load %arg1[%c0_10, %c160] : memref<64x384xbf16, #tpu.memory_space<vmem>>, vector<32x32xbf16>
    %cst_11 = arith.constant dense<0.000000e+00> : vector<1x32xf32>
    %30 = tpu.matmul %28, %29, %cst_11 {dimension_numbers = #tpu.dot_dimension_numbers<[1], [0], [0], [1], [0, 0, 1, 1], [], []>} : vector<1x32xbf16>, vector<32x32xbf16>, vector<1x32xf32> -> vector<1x32xf32>
    %31 = arith.addf %15, %30 : vector<1x32xf32>
    %32 = vector.extract_strided_slice %3 {offsets = [0, 0], sizes = [1, 32], strides = [1, 1]} : vector<1x128xf32> to vector<1x32xf32>
    %33 = arith.addf %31, %32 : vector<1x32xf32>
    %cst_12 = arith.constant 0.000000e+00 : f32
    %34 = vector.broadcast %cst_12 : f32 to vector<1x32xf32>
    %35 = arith.maximumf %33, %34 : vector<1x32xf32>
    %36 = arith.truncf %35 : vector<1x32xf32> to vector<1x32xbf16>
    %c0_13 = arith.constant 0 : index
    %c192 = arith.constant 192 : index
    %37 = vector.load %arg1[%c0_13, %c192] : memref<64x384xbf16, #tpu.memory_space<vmem>>, vector<32x96xbf16>
    %cst_14 = arith.constant dense<0.000000e+00> : vector<1x96xf32>
    %38 = tpu.matmul %36, %37, %cst_14 {dimension_numbers = #tpu.dot_dimension_numbers<[1], [0], [0], [1], [0, 0, 1, 1], [], []>} : vector<1x32xbf16>, vector<32x96xbf16>, vector<1x96xf32> -> vector<1x96xf32>
    %39 = vector.extract_strided_slice %3 {offsets = [0, 32], sizes = [1, 96], strides = [1, 1]} : vector<1x128xf32> to vector<1x96xf32>
    %40 = arith.addf %38, %39 : vector<1x96xf32>
    %41 = vector.extract_strided_slice %40 {offsets = [0, 0], sizes = [1, 32], strides = [1, 1]} : vector<1x96xf32> to vector<1x32xf32>
    %42 = vector.extract_strided_slice %14 {offsets = [0, 0], sizes = [1, 32], strides = [1, 1]} : vector<1x96xf32> to vector<1x32xf32>
    %43 = arith.addf %41, %42 : vector<1x32xf32>
    %44 = arith.negf %43 : vector<1x32xf32>
    %45 = math.exp %44 : vector<1x32xf32>
    %cst_15 = arith.constant 1.000000e+00 : f32
    %46 = vector.broadcast %cst_15 : f32 to vector<1x32xf32>
    %47 = arith.addf %46, %45 : vector<1x32xf32>
    %48 = arith.divf %46, %47 : vector<1x32xf32>
    %49 = vector.extract_strided_slice %40 {offsets = [0, 32], sizes = [1, 32], strides = [1, 1]} : vector<1x96xf32> to vector<1x32xf32>
    %50 = vector.extract_strided_slice %14 {offsets = [0, 32], sizes = [1, 32], strides = [1, 1]} : vector<1x96xf32> to vector<1x32xf32>
    %51 = arith.addf %49, %50 : vector<1x32xf32>
    %52 = arith.negf %51 : vector<1x32xf32>
    %53 = math.exp %52 : vector<1x32xf32>
    %cst_16 = arith.constant 1.000000e+00 : f32
    %54 = vector.broadcast %cst_16 : f32 to vector<1x32xf32>
    %55 = arith.addf %54, %53 : vector<1x32xf32>
    %56 = arith.divf %54, %55 : vector<1x32xf32>
    %57 = vector.extract_strided_slice %40 {offsets = [0, 64], sizes = [1, 32], strides = [1, 1]} : vector<1x96xf32> to vector<1x32xf32>
    %58 = vector.extract_strided_slice %14 {offsets = [0, 64], sizes = [1, 32], strides = [1, 1]} : vector<1x96xf32> to vector<1x32xf32>
    %59 = arith.mulf %48, %58 : vector<1x32xf32>
    %60 = arith.addf %57, %59 : vector<1x32xf32>
    %61 = math.tanh %60 : vector<1x32xf32>
    %cst_17 = arith.constant 1.000000e+00 : f32
    %62 = vector.broadcast %cst_17 : f32 to vector<1x32xf32>
    %63 = arith.subf %62, %56 : vector<1x32xf32>
    %64 = arith.mulf %63, %61 : vector<1x32xf32>
    %65 = arith.mulf %56, %1 : vector<1x32xf32>
    %66 = arith.addf %64, %65 : vector<1x32xf32>
    %67 = arith.truncf %66 : vector<1x32xf32> to vector<1x32xbf16>
    %c0_18 = arith.constant 0 : index
    %c288 = arith.constant 288 : index
    %68 = vector.load %arg1[%c0_18, %c288] : memref<64x384xbf16, #tpu.memory_space<vmem>>, vector<32x20xbf16>
    %cst_19 = arith.constant dense<0.000000e+00> : vector<1x20xf32>
    %69 = tpu.matmul %67, %68, %cst_19 {dimension_numbers = #tpu.dot_dimension_numbers<[1], [0], [0], [1], [0, 0, 1, 1], [], []>} : vector<1x32xbf16>, vector<32x20xbf16>, vector<1x20xf32> -> vector<1x20xf32>
    %70 = arith.addf %69, %4 : vector<1x20xf32>
    %cst_20 = arith.constant dense<0xFF800000> : vector<1xf32>
    %71 = vector.multi_reduction <maximumf>, %70, %cst_20 [1] : vector<1x20xf32> to vector<1xf32>
    %72 = vector.shape_cast %71 : vector<1xf32> to vector<1x1xf32>
    %73 = vector.broadcast %72 : vector<1x1xf32> to vector<1x20xf32>
    %74 = arith.subf %70, %73 : vector<1x20xf32>
    %75 = math.exp %74 : vector<1x20xf32>
    %cst_21 = arith.constant dense<0.000000e+00> : vector<1xf32>
    %76 = vector.multi_reduction <add>, %75, %cst_21 [1] : vector<1x20xf32> to vector<1xf32>
    %77 = vector.shape_cast %76 : vector<1xf32> to vector<1x1xf32>
    %78 = math.log %77 : vector<1x1xf32>
    %79 = vector.broadcast %78 : vector<1x1xf32> to vector<1x20xf32>
    %80 = arith.subf %74, %79 : vector<1x20xf32>
    %cst_22 = arith.constant 0.000000e+00 : f32
    %81 = vector.broadcast %cst_22 : f32 to vector<1x128xf32>
    %c0_23 = arith.constant 0 : index
    %c0_24 = arith.constant 0 : index
    %82 = vector.load %arg2[%c0_23, %c0_24] : memref<1x128xf32, #tpu.memory_space<vmem>>, vector<1x128xf32>
    tpu.vector_store %arg2[%c0_23, %c0_24], %81 {strides = array<i32>} : memref<1x128xf32, #tpu.memory_space<vmem>>, vector<1x128xf32>,
    %c0_25 = arith.constant 0 : index
    %c0_26 = arith.constant 0 : index
    %83 = vector.load %arg2[%c0_25, %c0_26] : memref<1x128xf32, #tpu.memory_space<vmem>>, vector<1x20xf32>
    tpu.vector_store %arg2[%c0_25, %c0_26], %80 {strides = array<i32>} : memref<1x128xf32, #tpu.memory_space<vmem>>, vector<1x20xf32>,
    %c0_27 = arith.constant 0 : index
    %c32 = arith.constant 32 : index
    %84 = vector.load %arg2[%c0_27, %c32] : memref<1x128xf32, #tpu.memory_space<vmem>>, vector<1x32xf32>
    tpu.vector_store %arg2[%c0_27, %c32], %66 {strides = array<i32>} : memref<1x128xf32, #tpu.memory_space<vmem>>, vector<1x32xf32>,
    %c0_28 = arith.constant 0 : index
    %c64 = arith.constant 64 : index
    %85 = vector.load %arg2[%c0_28, %c64] : memref<1x128xf32, #tpu.memory_space<vmem>>, vector<1x15xf32>
    tpu.vector_store %arg2[%c0_28, %c64], %24 {strides = array<i32>} : memref<1x128xf32, #tpu.memory_space<vmem>>, vector<1x15xf32>,
    return
  }
}

</mosaic_0001>

<bundles_post_ra>
// kernel: _attn_decoder_step.1
= control target key start
LH: loop header
LB: loop body
LE: loop exit
PB: predicated region body
PF: predicated region fallthrough
CT: control target
= control target key end

     0   :  { %7 = vsyncpa [#allocation3], 0  ;;  %s505_s12 = smov [#allocation2]   ;;  %s506_s14 = smov 192   ;;  %s603_s0 = inlined_call_operand.vmem [shape: f32[24,128], index: 0, kind: input, shape index: {}]   ;;  %s604_s1 = inlined_call_operand.hbm [shape: bf16[64,384], index: 1, kind: input, shape index: {}]   ;;  %s605_s2 = inlined_call_operand.vmem [shape: f32[1,128], index: 2, kind: output, shape index: {}]  }
   0x1   :  { %s14_s11 = sshll.u32 %s604_s1, 4  ;;  %s16_s13 = sshll.u32 %s505_s12, 4  ;;  %s15_s11 = int_to_ptr.hbm [resolvable:$true] %s14_s11  ;;  %s17_s13 = int_to_ptr.vmem [resolvable:$true] %s16_s13 }
   0x2   :  { %s507_s15 = smov 12  }
   0x3   :  { %22 = dma.hbm_to_vmem [thread:$0]  %s15_s11, 1536, %s17_s13, [#allocation3], %s506_s14, %s506_s14, %s507_s15  }
   0x4   :  { %503 = dma.done.wait [#allocation3], 1536  }
   0x5   :  { %504 = vsyncadd [#allocation3], 4294965760  ;;  %v396_v0 = vld [vmem:[#allocation2 + $0x48] sm:$0xf]  ;;  %v448_v1 = vld [vmem:[#allocation2 + $0x50] sm:$0xf0] }
   0x6   :  { %v388_v2 = vld [vmem:[#allocation2 + $0x30] sm:$0xf]  ;;  %v397_v3 = vor.u32 %v448_v1, %v396_v0  ;;  %v446_v4 = vld [vmem:[#allocation2 + $0x38] sm:$0xf0]  ;;  %v454_v7 = vld [vmem:[#allocation2 + $0x24] sm:$0xf0] }
   0x7   :  { %v389_v5 = vor.u32 %v446_v4, %v388_v2  ;;  %v424_v6 = vld [vmem:[#allocation2 + $0x1c] sm:$0xf]  ;;  %v380_v9 = vld [vmem:[#allocation2 + $0x18] sm:$0xf]  ;;  %v444_v10 = vld [vmem:[#allocation2 + $0x20] sm:$0xf0] }
   0x8   :  { %91 = vmatpush.bf16.msra.mxu0 %v397_v3  ;;  %v411_v8 = vld [vmem:[#allocation2 + $0x1c] sm:$0xf]  ;;  %v425_v11 = vor.u32 %v454_v7, %v424_v6  ;;  %v450_v12 = vld [vmem:[#allocation2 + $0x24] sm:$0xf0]  ;;  %s508_s1 = smov 64   ;;  %v381_v14 = vor.u32 %v444_v10, %v380_v9  ;;  %s509_s16 = smov 96  }
   0x9   :  { %v412_v13 = vor.u32 %v450_v12, %v411_v8  ;;  %v372_v15 = vld [vmem:[#allocation2] sm:$0xf]  ;;  %v426_v17 = vld [vmem:[#allocation2 + $0x28] sm:$0xf0]  ;;  %v407_v19 = vld [vmem:[#allocation2 + $0x4] sm:$0xf] }
   0xa   :  { %231 = vrot.lane.b32.xlu2 %v425_v11, %s508_s1  ;;  %v453_v16 = vld [vmem:[#allocation2 + $0x20] sm:$0xf]  ;;  %v442_v18 = vld [vmem:[#allocation2 + $0x8] sm:$0xf0]  ;;  %v449_v20 = vld [vmem:[#allocation2 + $0xc] sm:$0xf0] }
   0xb   :  { %182 = vrot.lane.b32.xlu1 %v412_v13, %s509_s16  ;;  %v429_v21 = vor.u32 %v453_v16, %v426_v17  ;;  %v373_v22 = vor.u32 %v442_v18, %v372_v15  ;;  %v536_v23 = vld [vmem:[%s603_s0] sm:$0x1]  ;;  %v408_v24 = vor.u32 %v449_v20, %v407_v19  ;;  %vm83_vm0 = vcmask 523264   ;;  %v451_v26 = vld [vmem:[#allocation2 + $0x8] sm:$0xf]  ;;  %s510_s23 = smov 32  }
   0xc   :  { %92 = vmatpush.bf16.msra.mxu0 %v389_v5  ;;  %v540_v25 = vpack.c.bf16 %v536_v23, %v536_v23  ;;  %v418_v27 = vld [vmem:[#allocation2 + $0x10] sm:$0xf0]  ;;  %v549_v29 = vld [vmem:[%s603_s0 + $0x2] sm:$0x1]  ;;  %v29_v31 = vld [vmem:[%s603_s0 + $0x1] sm:$0x1] }
   0xd   :  { %v421_v28 = vor.u32 %v451_v26, %v418_v27  ;;  %vm114_vm1 = vcmask 114688   ;;  %v32_v42 = vld [vmem:[%s603_s0 + $0x8] sm:$0xff]  ;;  %v33_v43 = vld [vmem:[%s603_s0 + $0x10] sm:$0x7f]  ;;  %vm145_vm2 = vcmask 1046528   ;;  %vm146_vm3 = vcmask 1047552  }
   0xe   :  { %v140_v44 = vpack.c.bf16 %v33_v43, %v32_v42  ;;  %v511_v45 = vmov 65535   ;;  %v447_v49 = vld [vmem:[#allocation2 + $0x4c] sm:$0xf]  ;;  %v398_v50 = vld [vmem:[#allocation2 + $0x54] sm:$0xf0]  ;;  %vm141_vm8 = vcmask 121856  }
   0xf   :  { %v147_v46 = vsel %vm145_vm2, 4294967295, %v511_v45  ;;  %v445_v51 = vld [vmem:[#allocation2 + $0x34] sm:$0xf]  ;;  %v401_v52 = vor.u32 %v447_v49, %v398_v50  ;;  %v390_v53 = vld [vmem:[#allocation2 + $0x3c] sm:$0xf0]  ;;  %vm186_vm9 = vcmask 261120  }
  0x10   :  { %93 = vmatpush.bf16.msra.mxu0 %v381_v14  ;;  %v148_v47 = vsel %vm146_vm3, %v147_v46, 0  ;;  %v393_v54 = vor.u32 %v445_v51, %v390_v53  ;;  %v443_v55 = vld [vmem:[#allocation2 + $0x1c] sm:$0xf]  ;;  %v382_v56 = vld [vmem:[#allocation2 + $0x24] sm:$0xf0]  ;;  %vm342_vm14 = vcmask 155648  }
  0x11   :  { %v150_v48 = vand.u32 %v148_v47, %v140_v44  ;;  %104 = vmatpush.bf16.msra.mxu1 %v401_v52  ;;  %v385_v57 = vor.u32 %v443_v55, %v382_v56  ;;  %v441_v58 = vld [vmem:[#allocation2 + $0x4] sm:$0xf]  ;;  %v374_v59 = vld [vmem:[#allocation2 + $0xc] sm:$0xf0]  ;;  %v438_v52 = vld [vmem:[#allocation2 + $0x20] sm:$0xf] }
  0x12   :  { %233 = vrot.lane.b32.xlu2 %v429_v21, %s508_s1  ;;  %v377_v61 = vor.u32 %v441_v58, %v374_v59  ;;  %v416_v12 = vld [vmem:[#allocation2 + $0x4] sm:$0xf]  ;;  %v452_v13 = vld [vmem:[#allocation2 + $0xc] sm:$0xf0]  ;;  %v456_v53 = vld [vmem:[#allocation2 + $0x28] sm:$0xf0] }
  0x13   :  { %180 = vrot.lane.b32.xlu1 %v408_v24, %s509_s16  ;;  %159 = vmatpush.bf16.msra.mxu2 %v150_v48  ;;  %v417_v15 = vor.u32 %v452_v13, %v416_v12  ;;  %v439_v55 = vor.u32 %v456_v53, %v438_v52  ;;  %v455_v56 = vld [vmem:[#allocation2 + $0x10] sm:$0xf0]  ;;  %vm357_vm15 = vcmask 516352  }
  0x14   :  { %94 = vmatpush.bf16.msra.mxu0 %v373_v22 }
  0x15   :  { %105 = vmatpush.bf16.msra.mxu1 %v393_v54  ;;  %v434_v54 = vld [vmem:[#allocation2 + $0x8] sm:$0xf] }
  0x17   :  { %402 = vmatmul.msk.bf16.vlgmr.msra.gmra.mxu0 %vm83_vm0, %v540_v25 }
  0x19   :  { %106 = vmatpush.bf16.msra.mxu1 %v385_v57  ;;  %v435_v57 = vor.u32 %v455_v56, %v434_v54 }
  0x1a   :  { %241 = vrot.lane.b32.xlu2 %v549_v29, %s509_s16 }
  0x1b   :  { %229 = vrot.lane.b32.xlu1 %v421_v28, %s508_s1 }
  0x1d   :  { %107 = vmatpush.bf16.msra.mxu1 %v377_v61 }
  0x20   :  { %403 = vmatmul.msk.bf16.vlgmr.msra.gmra.mxu1 %vm83_vm0, %v540_v25 }
  0x64   :  { %v232_v10 = vpop.permute.xlu2 %231 }
  0x6c   :  { %v234_v11 = vpop.permute.xlu2 %233 }
  0x6d   :  { %v237_v14 = vsel %vm83_vm0, %v232_v10, %v234_v11  ;;  %v512_v11 = vmov 0.0  }
  0x6e   :  { %253 = vmatpush.bf16.msrb.mxu2 %v237_v14  ;;  %355 = vst [vmem:[%s605_s2] sm:$0x1] %v512_v11 }
  0x7d   :  { %v183_v30 = vpop.permute.xlu1 %182 }
  0x7e   :  { %196 = vmatpush.bf16.msra.mxu3 %v183_v30 }
  0x85   :  { %v181_v36 = vpop.permute.xlu1 %180 }
  0x86   :  { %197 = vmatpush.bf16.msra.mxu3 %v181_v36 }
  0x8d   :  { %v230_v22 = vpop.permute.xlu1 %229 }
  0x94   :  { %v96_v32 = vpop.f32.mrf.mxu0 }
  0x95   :  { %v113_v33 = vadd.f32 %v96_v32, %v29_v31  ;;  %v242_v32 = vpop.permute.xlu2 %241 }
  0x97   :  { %284 = vrot.lane.b32.xlu2 %v113_v33, %s510_s23  ;;  %261 = vrot.lane.b32.xlu1 %v113_v33, %s509_s16  ;;  %v115_v34 = vsel %vm114_vm1, %v113_v33, -inf }
  0x98   :  { %116 = vmax.xlane.f32.xlu0 %v115_v34 }
  0x9c   :  { %v98_v35 = vpop.f32.mrf.mxu0 }
  0x9d   :  { %v109_v16 = vpop.f32.mrf.mxu1 }
  0xa5   :  { %v111_v17 = vpop.f32.mrf.mxu1 }
  0xf1   :  { %v285_v49 = vpop.permute.xlu2 %284 }
 0x109   :  { %v262_v35 = vpop.permute.xlu1 %261 }
 0x10b   :  { %v117_v37 = vpop.xlane.xlu0 %116 }
 0x10c   :  { %v118_v38 = vsub.f32 %v113_v33, %v117_v37 }
 0x10e   :  { %v119_v39 = vmul.f32 1.442695, %v118_v38 }
 0x110   :  { %465 = vpow2.f32 %v119_v39 }
 0x116   :  { %v466_v40 = vpop.eup %465 }
 0x117   :  { %v121_v41 = vsel %vm114_vm1, %v466_v40, 0.0 }
 0x118   :  { %122 = vadd.xlane.f32.xlu0 %v121_v41 }
 0x12c   :  { %227 = vrot.lane.b32.xlu0 %v417_v15, %s508_s1 }
 0x134   :  { %322 = vrot.lane.b32.xlu0 %v439_v55, %s509_s16 }
 0x18b   :  { %v123_v60 = vpop.xlane.xlu0 %122 }
 0x18c   :  { %467 = vrcp.f32 %v123_v60  ;;  %v135_v1 = vand.u32 2147483648, %v123_v60  ;;  %v133_v3 = vand.u32 2147483647, %v123_v60  ;;  %vm129_vm5 = vweird.f32 %v123_v60 }
 0x18e   :  { %v136_v5 = vor.u32 1.1754944e-38, %v135_v1  ;;  %vm134_vm7 = vcmp.eq.f32.partialorder %v133_v3, 8.507059e+37 }
 0x192   :  { %v468_v62 = vpop.eup %467 }
 0x193   :  { %v125_v63 = vmul.f32 %v468_v62, %v123_v60  ;;  %vm130_vm4 = vweird.f32 %v468_v62 }
 0x194   :  { %vm131_vm6 = vmor %vm129_vm5, %vm130_vm4 }
 0x195   :  { %v126_v0 = vsub.f32 1.0, %v125_v63 }
 0x197   :  { %v127_v2 = vmul.f32 %v468_v62, %v126_v0 }
 0x199   :  { %v128_v4 = vadd.f32 %v468_v62, %v127_v2 }
 0x19b   :  { %v132_v6 = vsel %vm131_vm6, %v468_v62, %v128_v4 }
 0x19c   :  { %v137_v7 = vsel %vm134_vm7, %v136_v5, %v132_v6  ;;  %v31_v6 = vld [vmem:[%s603_s0 + $0x3] sm:$0x1] }
 0x19d   :  { %v566_v8 = vmul.f32 %v466_v40, %v137_v7 }
 0x19e   :  { %v228_v21 = vpop.permute.xlu0 %227 }
 0x19f   :  { %v139_v9 = vpack.c.bf16 %v566_v8, %v566_v8  ;;  %v236_v24 = vsel %vm83_vm0, %v228_v21, %v230_v22  ;;  %vm363_vm0 = vcmask 639488  }
 0x1a0   :  { %254 = vmatpush.bf16.msrb.mxu2 %v236_v24 }
 0x1a1   :  { %404 = vmatmul.msk.bf16.vlgmr.msra.gmra.mxu2 %vm141_vm8, %v139_v9 }
 0x1a6   :  { %v323_v61 = vpop.permute.xlu0 %322 }
 0x1a7   :  { %335 = vmatpush.bf16.msrb.mxu3 %v323_v61 }
 0x224   :  { %v161_v18 = vpop.f32.mrf.mxu2 }
 0x225   :  { %v165_v19 = vpack.c.bf16 %v161_v18, %v161_v18 }
 0x227   :  { %413 = vmatmul.msk.bf16.vlgmr.msra.gmra.mxu3 %vm186_vm9, %v165_v19 }
 0x22c   :  { %v163_v20 = vpop.f32.mrf.mxu2 }
 0x2aa   :  { %v199_v25 = vpop.f32.mrf.mxu3 }
 0x2ab   :  { %v203_v26 = vadd.f32 %v199_v25, %v109_v16 }
 0x2ad   :  { %v204_v27 = vadd.f32 %v203_v26, %v549_v29 }
 0x2af   :  { %v205_v28 = vmax.f32 %v204_v27, 0.0 }
 0x2b1   :  { %v206_v30 = vpack.c.bf16 %v205_v28, %v205_v28 }
 0x2b2   :  { %v201_v31 = vpop.f32.mrf.mxu3 }
 0x2b3   :  { %430 = vmatmul.msk.bf16.vlgmr.msrb.gmra.mxu2 %vm186_vm9, %v206_v30 }
 0x336   :  { %v256_v33 = vpop.f32.mrf.mxu2 }
 0x337   :  { %v257_v34 = vadd.f32 %v256_v33, %v242_v32 }
 0x339   :  { %v264_v36 = vadd.f32 %v262_v35, %v257_v34 }
 0x33b   :  { %v431_v37 = vmul.f32 -1.442695, %v264_v36 }
 0x33d   :  { %469 = vpow2.f32 %v431_v37 }
 0x33e   :  { %v258_v38 = vpop.f32.mrf.mxu2 }
 0x343   :  { %v470_v39 = vpop.eup %469 }
 0x344   :  { %v268_v40 = vadd.f32 1.0, %v470_v39 }
 0x346   :  { %471 = vrcp.f32 %v268_v40  ;;  %v280_v29 = vand.u32 2147483648, %v268_v40  ;;  %v278_v45 = vand.u32 2147483647, %v268_v40  ;;  %vm274_vm11 = vweird.f32 %v268_v40 }
 0x348   :  { %v281_v47 = vor.u32 1.1754944e-38, %v280_v29  ;;  %vm279_vm13 = vcmp.eq.f32.partialorder %v278_v45, 8.507059e+37 }
 0x34c   :  { %v472_v41 = vpop.eup %471 }
 0x34d   :  { %v270_v42 = vmul.f32 %v472_v41, %v268_v40  ;;  %vm275_vm10 = vweird.f32 %v472_v41 }
 0x34e   :  { %vm276_vm12 = vmor %vm274_vm11, %vm275_vm10 }
 0x34f   :  { %v271_v43 = vsub.f32 1.0, %v270_v42 }
 0x351   :  { %v272_v44 = vmul.f32 %v472_v41, %v271_v43 }
 0x353   :  { %v273_v46 = vadd.f32 %v472_v41, %v272_v44 }
 0x355   :  { %v277_v48 = vsel %vm276_vm12, %v472_v41, %v273_v46 }
 0x356   :  { %v282_v50 = vsel %vm279_vm13, %v281_v47, %v277_v48 }
 0x357   :  { %v287_v51 = vmul.f32 %v285_v49, %v282_v50  ;;  %v294_v63 = vsub.f32 1.0, %v282_v50  ;;  %v300_v1 = vmul.f32 %v282_v50, %v536_v23 }
 0x359   :  { %289 = vrot.lane.b32.xlu1 %v287_v51, %s508_s1 }
 0x361   :  { %320 = vrot.lane.b32.xlu1 %v435_v57, %s509_s16 }
 0x3cb   :  { %v290_v58 = vpop.permute.xlu1 %289 }
 0x3cc   :  { %v292_v59 = vadd.f32 %v290_v58, %v257_v34 }
 0x3ce   :  { %473 = vtanh.f32 %v292_v59 }
 0x3d3   :  { %v321_v62 = vpop.permute.xlu1 %320 }
 0x3d4   :  { %v474_v60 = vpop.eup %473  ;;  %336 = vmatpush.bf16.msrb.mxu3 %v321_v62 }
 0x3d5   :  { %296 = vrot.lane.b32.xlu2 %v474_v60, %s509_s16 }
 0x42f   :  { %v297_v0 = vpop.permute.xlu2 %296 }
 0x430   :  { %v299_v2 = vmul.f32 %v297_v0, %v294_v63 }
 0x432   :  { %v301_v3 = vadd.f32 %v300_v1, %v299_v2 }
 0x434   :  { %v302_v4 = vpack.c.bf16 %v301_v3, %v301_v3 }
 0x436   :  { %308 = vrot.lane.b32.xlu2 %v302_v4, %s509_s16 }
 0x43e   :  { %360 = vrot.lane.b32.xlu2 %v566_v8, %s508_s1 }
 0x490   :  { %v309_v5 = vpop.permute.xlu2 %308 }
 0x491   :  { %440 = vmatmul.msk.bf16.vlgmr.msrb.gmra.mxu3 %vm186_vm9, %v309_v5 }
 0x498   :  { %v361_v20 = vpop.permute.xlu2 %360 }
 0x514   :  { %v338_v7 = vpop.f32.mrf.mxu3 }
 0x515   :  { %v339_v9 = vadd.f32 %v338_v7, %v31_v6 }
 0x517   :  { %v343_v23 = vsel %vm342_vm14, %v339_v9, -inf }
 0x518   :  { %344 = vmax.xlane.f32.xlu0 %v343_v23 }
 0x51c   :  { %v340_v10 = vpop.f32.mrf.mxu3 }
 0x58b   :  { %v345_v8 = vpop.xlane.xlu0 %344 }
 0x58c   :  { %v346_v12 = vsub.f32 %v339_v9, %v345_v8 }
 0x58e   :  { %v347_v13 = vmul.f32 1.442695, %v346_v12 }
 0x590   :  { %475 = vpow2.f32 %v347_v13 }
 0x596   :  { %v476_v14 = vpop.eup %475 }
 0x597   :  { %v349_v15 = vsel %vm342_vm14, %v476_v14, 0.0 }
 0x598   :  { %350 = vadd.xlane.f32.xlu1 %v349_v15 }
 0x60b   :  { %v351_v16 = vpop.xlane.xlu1 %350 }
 0x60c   :  { %477 = vlog2.f32 %v351_v16 }
 0x612   :  { %v478_v17 = vpop.eup %477 }
 0x613   :  { %v353_v18 = vmul.f32 0.6931472, %v478_v17 }
 0x615   :  { %v354_v19 = vsub.f32 %v346_v12, %v353_v18 }
 0x617   :  { %356 = vst.msk [vmem:[%s605_s2] sm:$0x1] %vm342_vm14, %v354_v19 }
 0x618   :  { %358 = vst.msk [vmem:[%s605_s2] sm:$0x1] %vm357_vm15, %v301_v3 }
 0x619   :  { %364 = vst.msk [vmem:[%s605_s2] sm:$0x1] %vm363_vm0, %v361_v20 }
 0x61a   :  { %369 = vsyncpa [#allocation3], 1 }

</bundles_post_ra>
